<compile_context>
chip_gen: v7x
topology: tpu7x:2x2x1
jax: 0.10.0
libtpu: 0.0.40
codegen_flags: <defaults>
</compile_context>

<pallas_src>
import numpy as np
import jax
import jax.numpy as jnp
from jax.experimental import pallas as pl
from jax.experimental.pallas import tpu as pltpu

START_NUM, CENTER_NUM, END_NUM = 8, 16, 8
K_SAMPLES = START_NUM + CENTER_NUM + END_NUM  # 32
EXTEND_RATIO = 0.2

TILE_M_CAP = 1024  # lane axis: multiple of 128 -> unmasked, lane-dense stores
TILE_N_CAP = 512   # sublane axis: multiple of 8


# ----------------------------------------------------------------------------
# Deterministic PropTcfg sampling mask, laid out as (K*T, T*T):
#   mask[(k*T + t), (s*T + e)]
# ----------------------------------------------------------------------------
def gen_prop_tcfg_mask(T: int) -> np.ndarray:
    mask = np.zeros((K_SAMPLES, T, T, T), dtype=np.float32)  # [k, t, s, e]
    for s in range(T):
        for e in range(s, T):  # e < s -> invalid proposal -> zero features
            d = float(e - s + 1)
            ext = d * EXTEND_RATIO
            regions = (
                (s - ext, s + ext, START_NUM, 0),
                (float(s), float(e), CENTER_NUM, START_NUM),
                (e - ext, e + ext, END_NUM, START_NUM + CENTER_NUM),
            )
            for lo, hi, n, off in regions:
                if n == 1:
                    pts = [0.5 * (lo + hi)]
                else:
                    pts = [lo + (hi - lo) * i / (n - 1) for i in range(n)]
                for k_idx, p in enumerate(pts):
                    p0 = int(np.floor(p))
                    w1 = p - p0
                    w0 = 1.0 - w1
                    if 0 <= p0 < T:
                        mask[off + k_idx, p0, s, e] += w0
                    if 0 <= p0 + 1 < T:
                        mask[off + k_idx, p0 + 1, s, e] += w1
    return mask.reshape(K_SAMPLES * T, T * T)


# ----------------------------------------------------------------------------
# Fused kernel:  out = LHS (N, K*T) @ Mask (K*T, M) + row_bias (N, 1)
# ----------------------------------------------------------------------------
def _fused_matmul_bias_kernel(lhs_ref, mask_ref, bias_ref, out_ref):
    out_ref[...] = (
        jnp.dot(lhs_ref[...], mask_ref[...], preferred_element_type=jnp.float32)
        + bias_ref[...]
    )


def _pick_tile(dim: int, cap: int) -> int:
    # full-dim block if it fits the cap (always a legal block shape),
    # otherwise a fixed aligned tile; ragged last block handled by cdiv grid.
    return dim if dim <= cap else cap


def fused_prop_conv_matmul(lhs_bf16, mask_bf16, row_bias_f32):
    n, kt = lhs_bf16.shape
    kt2, m = mask_bf16.shape
    assert kt == kt2
    tile_n = _pick_tile(n, TILE_N_CAP)
    tile_m = _pick_tile(m, TILE_M_CAP)
    grid = (pl.cdiv(n, tile_n), pl.cdiv(m, tile_m))
    return pl.pallas_call(
        _fused_matmul_bias_kernel,
        out_shape=jax.ShapeDtypeStruct((n, m), jnp.float32),
        grid_spec=pltpu.PrefetchScalarGridSpec(
            num_scalar_prefetch=0,
            grid=grid,
            in_specs=[
                pl.BlockSpec((tile_n, kt), lambda i, j: (i, 0)),
                pl.BlockSpec((kt, tile_m), lambda i, j: (0, j)),
                pl.BlockSpec((tile_n, 1), lambda i, j: (i, 0)),
            ],
            out_specs=pl.BlockSpec((tile_n, tile_m), lambda i, j: (i, j)),
        ),
        compiler_params=pltpu.CompilerParams(
            dimension_semantics=("parallel", "parallel"),
        ),
    )(lhs_bf16, mask_bf16, row_bias_f32)


# ----------------------------------------------------------------------------
# Module forward
# ----------------------------------------------------------------------------
@jax.jit
def proposal_feature_generation(action_score, xc_feat, conv_w, conv_b, mask_kt):
    """action_score: (B,1,T), xc_feat: (B,Cin,T), conv_w: (Cout,Cin,32),
    conv_b: (Cout,), mask_kt: (32*T, T*T) bf16."""
    B, _, T = action_score.shape
    _, Cin, _ = xc_feat.shape
    Cout = conv_w.shape[0]
    K = K_SAMPLES

    # Action-path rows: identity over the 32-sample axis times the score.
    a2d = action_score.reshape(B, T)
    a_rows = jnp.einsum("kq,bt->bkqt", jnp.eye(K, dtype=jnp.float32), a2d)
    a_rows = a_rows.reshape(B * K, K * T)

    # Conv3d(kernel=(32,1,1)) folded into the LHS:
    #   Y[b,o,k,t] = sum_c W[o,c,k] * xc[b,c,t]   (tiny prep einsum, done in XLA)
    y_rows = jnp.einsum("ock,bct->bokt", conv_w, xc_feat).reshape(B * Cout, K * T)

    lhs = jnp.concatenate([a_rows, y_rows], axis=0).astype(jnp.bfloat16)
    row_bias = jnp.concatenate(
        [jnp.zeros((B * K,), jnp.float32), jnp.tile(conv_b, B)]
    ).reshape(-1, 1)

    out = fused_prop_conv_matmul(lhs, mask_kt, row_bias)  # (B*K + B*Cout, T*T) f32

    action_feat = out[: B * K].reshape(B, K, T, T)          # squeeze(1) of PropTcfg
    net_feat = out[B * K:].reshape(B, Cout, T, T)           # conv3d + squeeze(2)
    return action_feat, net_feat


if __name__ == "__main__":
    # Small shapes consistent with the module (in_channels=128 -> 8, 512 -> 64 here).
    B, Cin, T, Cout = 2, 8, 16, 64

    key = jax.random.PRNGKey(0)
    k1, k2, k3, k4 = jax.random.split(key, 4)
    action_score = jax.random.normal(k1, (B, 1, T), dtype=jnp.float32)
    xc_feat = jax.random.normal(k2, (B, Cin, T), dtype=jnp.float32)
    conv_w = jax.random.normal(k3, (Cout, Cin, K_SAMPLES), dtype=jnp.float32) / np.sqrt(
        Cin * K_SAMPLES
    )
    conv_b = 0.01 * jax.random.normal(k4, (Cout,), dtype=jnp.float32)

    mask_np = gen_prop_tcfg_mask(T)                         # f32 host constant
    mask_bf16 = jnp.asarray(mask_np, dtype=jnp.bfloat16)    # (32*T, T*T)

    action_feat, net_feat = proposal_feature_generation(
        action_score, xc_feat, conv_w, conv_b, mask_bf16
    )
    jax.block_until_ready((action_feat, net_feat))

    # Pure-JAX f32 reference (loose tolerance: bf16 mask/LHS + MXU accumulation).
    mask4 = jnp.asarray(mask_np).reshape(K_SAMPLES, T, T, T)  # [k, t, s, e]
    af_ref = jnp.einsum("bt,ktse->bkse", action_score[:, 0, :], mask4)
    tc_ref = jnp.einsum("bct,ktse->bckse", xc_feat, mask4)
    nf_ref = jnp.einsum("ock,bckse->bose", conv_w, tc_ref) + conv_b[None, :, None, None]
    np.testing.assert_allclose(np.asarray(action_feat), np.asarray(af_ref),
                               rtol=5e-2, atol=5e-2)
    np.testing.assert_allclose(np.asarray(net_feat), np.asarray(nf_ref),
                               rtol=5e-2, atol=5e-2)

    assert action_feat.shape == (B, K_SAMPLES, T, T)
    assert net_feat.shape == (B, Cout, T, T)
    print("KERNEL_OK")
</pallas_src>

<mosaic_0001>
module attributes {stable_mosaic.version = 11 : i64} {
  func.func @_fused_matmul_bias_kernel(%arg0: i32, %arg1: i32, %arg2: memref<192x512xbf16, #tpu.memory_space<vmem>>, %arg3: memref<512x256xbf16, #tpu.memory_space<vmem>>, %arg4: memref<192x1xf32, #tpu.memory_space<vmem>>, %arg5: memref<192x256xf32, #tpu.memory_space<vmem>>) attributes {dimension_semantics = [#tpu.dimension_semantics<parallel>, #tpu.dimension_semantics<parallel>], iteration_bounds = array<i64: 1, 1>, scalar_prefetch = 0 : i64, scratch_operands = 0 : i64, tpu.core_type = #tpu.core_type<tc>, window_params = [{transform_indices = @transform_0, window_bounds = array<i64: 192, 512>}, {transform_indices = @transform_1, window_bounds = array<i64: 512, 256>}, {transform_indices = @transform_2, window_bounds = array<i64: 192, 1>}, {transform_indices = @transform_3, window_bounds = array<i64: 192, 256>}]} {
    %c0 = arith.constant 0 : index
    %c0_0 = arith.constant 0 : index
    %0 = vector.load %arg2[%c0, %c0_0] : memref<192x512xbf16, #tpu.memory_space<vmem>>, vector<192x512xbf16>
    %c0_1 = arith.constant 0 : index
    %c0_2 = arith.constant 0 : index
    %1 = vector.load %arg3[%c0_1, %c0_2] : memref<512x256xbf16, #tpu.memory_space<vmem>>, vector<512x256xbf16>
    %cst = arith.constant dense<0.000000e+00> : vector<192x256xf32>
    %2 = tpu.matmul %0, %1, %cst {dimension_numbers = #tpu.dot_dimension_numbers<[1], [0], [0], [1], [0, 0, 1, 1], [], []>} : vector<192x512xbf16>, vector<512x256xbf16>, vector<192x256xf32> -> vector<192x256xf32>
    %c0_3 = arith.constant 0 : index
    %c0_4 = arith.constant 0 : index
    %3 = vector.load %arg4[%c0_3, %c0_4] : memref<192x1xf32, #tpu.memory_space<vmem>>, vector<192x1xf32>
    %4 = vector.broadcast %3 : vector<192x1xf32> to vector<192x256xf32>
    %5 = arith.addf %2, %4 : vector<192x256xf32>
    %c0_5 = arith.constant 0 : index
    %c0_6 = arith.constant 0 : index
    %6 = vector.load %arg5[%c0_5, %c0_6] : memref<192x256xf32, #tpu.memory_space<vmem>>, vector<192x256xf32>
    tpu.vector_store %arg5[%c0_5, %c0_6], %5 {strides = array<i32>} : memref<192x256xf32, #tpu.memory_space<vmem>>, vector<192x256xf32>,
    return
  }
  func.func @transform_0(%arg0: i32, %arg1: i32) -> (i32, i32) {
    %c0_i32 = arith.constant 0 : i32
    %c0_i32_0 = arith.constant 0 : i32
    return %arg0, %c0_i32 : i32, i32
  }
  func.func @transform_1(%arg0: i32, %arg1: i32) -> (i32, i32) {
    %c0_i32 = arith.constant 0 : i32
    %c0_i32_0 = arith.constant 0 : i32
    return %c0_i32, %arg1 : i32, i32
  }
  func.func @transform_2(%arg0: i32, %arg1: i32) -> (i32, i32) {
    %c0_i32 = arith.constant 0 : i32
    %c0_i32_0 = arith.constant 0 : i32
    return %arg0, %c0_i32 : i32, i32
  }
  func.func @transform_3(%arg0: i32, %arg1: i32) -> (i32, i32) {
    %c0_i32 = arith.constant 0 : i32
    return %arg0, %arg1 : i32, i32
  }
}

</mosaic_0001>

<bundles_post_ra>
// kernel: tile.8
= control target key start
LH: loop header
LB: loop body
LE: loop exit
PB: predicated region body
PF: predicated region fallthrough
CT: control target
= control target key end

     0   :  { %s22_s0 = inlined_call_operand.vmem [shape: f32[64], index: 0, kind: input, shape index: {}]   ;;  %s23_s1 = inlined_call_operand.vmem [shape: f32[2,64], index: 1, kind: output, shape index: {}]  }
   0x1   :  { %v4_v0 = vld [vmem:[%s22_s0] ss:$0 sm:$0xff] }
   0x2   :  { %5 = vst [vmem:[%s23_s1] sm:$0x3] %v4_v0 }

// kernel: tile.9
= control target key start
LH: loop header
LB: loop body
LE: loop exit
PB: predicated region body
PF: predicated region fallthrough
CT: control target
= control target key end

     0   :  { %vm7_vm0 = vcmask 523264   ;;  %vm13_vm1 = vcmask 1048064   ;;  %s39_s0 = inlined_call_operand.vmem [shape: f32[2,64], index: 0, kind: input, shape index: {}]   ;;  %s40_s1 = inlined_call_operand.vmem [shape: f32[128], index: 1, kind: output, shape index: {}]  }
   0x1   :  { %v4_v0 = vld [vmem:[%s39_s0] sm:$0x3]  ;;  %s22_s0 = smov 64  }
   0x2   :  { %5 = vst [vmem:[#allocation1] sm:$0x3] %v4_v0 }
   0x9   :  { %v10_v1 = vld [vmem:[#allocation1 + $0x1] sm:$0x1]   ;;  %v6_v2 = vld [vmem:[#allocation1] sm:$0x1]  }
   0xa   :  { %11 = vrot.lane.b32.xlu0 %v10_v1, %s22_s0  ;;  %8 = vst.msk [vmem:[#allocation0] sm:$0x1] %vm7_vm0, %v6_v2  }
  0x7c   :  { %v12_v3 = vpop.permute.xlu0 %11  }
  0x7d   :  { %14 = vst.msk [vmem:[#allocation0] sm:$0x1] %vm13_vm1, %v12_v3  }
  0x84   :  { %v18_v4 = vld [vmem:[#allocation0] sm:$0x1] }
  0x85   :  { %20 = vst [vmem:[%s40_s1] sm:$0x1] %v18_v4 }

// kernel: proposal_feature_generation.1
= control target key start
LH: loop header
LB: loop body
LE: loop exit
PB: predicated region body
PF: predicated region fallthrough
CT: control target
= control target key end

     0   :  { %v1567_v26 = vmov 0   ;;  %s2140_s1 = inlined_call_operand.vmem [shape: bf16[512,256], index: 1, kind: input, shape index: {}]   ;;  %s2141_s0 = inlined_call_operand.vmem [shape: bf16[192,512], index: 0, kind: input, shape index: {}]   ;;  %s2142_s2 = inlined_call_operand.vmem [shape: f32[192,1], index: 2, kind: input, shape index: {}]   ;;  %s2143_s3 = inlined_call_operand.vmem [shape: f32[192,256], index: 3, kind: output, shape index: {}]  }
   0x1   :  { %v1399_v0 = vld [vmem:[%s2140_s1 + $0x4] ss:$8 sps:$4 sm:$0xff]   ;;  %v1403_v2 = vld [vmem:[%s2140_s1] ss:$8 sps:$4 sm:$0xff]   ;;  %v1405_v4 = vld [vmem:[%s2140_s1 + $0x14] ss:$8 sps:$4 sm:$0xff]   ;;  %1397 = vset.pattern.permute.xlu0 %v1567_v26  ;;  %1398 = vset.pattern.permute.xlu1 %v1567_v26 }
   0x2   :  { %v1401_v1 = vld [vmem:[%s2140_s1 + $0x104] ss:$8 sps:$4 sm:$0xff]   ;;  %830 = vmatprep.subr.bf16.mxu1 %v1399_v0  ;;  %v1404_v3 = vld [vmem:[%s2140_s1 + $0x100] ss:$8 sps:$4 sm:$0xff]   ;;  %v1407_v5 = vld [vmem:[%s2140_s1 + $0x114] ss:$8 sps:$4 sm:$0xff]  }
   0x3   :  { %983 = vmatprep.subr.bf16.mxu0 %v1401_v1  ;;  %831 = vmatpush1.bf16.msra.mxu1 %v1403_v2  ;;  %v1409_v6 = vld [vmem:[%s2140_s1 + $0x10] ss:$8 sps:$4 sm:$0xff]   ;;  %v1411_v8 = vld [vmem:[%s2140_s1 + $0x24] ss:$8 sps:$4 sm:$0xff]   ;;  %v1415_v10 = vld [vmem:[%s2140_s1 + $0x20] ss:$8 sps:$4 sm:$0xff]  }
   0x4   :  { %984 = vmatpush1.bf16.msra.mxu0 %v1404_v3  ;;  %832 = vmatprep.subr.bf16.mxu1 %v1405_v4  ;;  %v1410_v7 = vld [vmem:[%s2140_s1 + $0x110] ss:$8 sps:$4 sm:$0xff]   ;;  %v1413_v9 = vld [vmem:[%s2140_s1 + $0x124] ss:$8 sps:$4 sm:$0xff]   ;;  %v1416_v11 = vld [vmem:[%s2140_s1 + $0x120] ss:$8 sps:$4 sm:$0xff]  }
   0x5   :  { %985 = vmatprep.subr.bf16.mxu0 %v1407_v5  ;;  %v1417_v12 = vld [vmem:[%s2140_s1 + $0x34] ss:$8 sps:$4 sm:$0xff]   ;;  %v1421_v14 = vld [vmem:[%s2140_s1 + $0x30] ss:$8 sps:$4 sm:$0xff]   ;;  %v1423_v16 = vld [vmem:[%s2140_s1 + $0x44] ss:$8 sps:$4 sm:$0xff]  }
   0x6   :  { %v1419_v13 = vld [vmem:[%s2140_s1 + $0x134] ss:$8 sps:$4 sm:$0xff]   ;;  %v1422_v15 = vld [vmem:[%s2140_s1 + $0x130] ss:$8 sps:$4 sm:$0xff]   ;;  %v1425_v17 = vld [vmem:[%s2140_s1 + $0x144] ss:$8 sps:$4 sm:$0xff]  }
   0x7   :  { %833 = vmatpush1.bf16.msra.mxu1 %v1409_v6  ;;  %v1427_v18 = vld [vmem:[%s2140_s1 + $0x40] ss:$8 sps:$4 sm:$0xff]   ;;  %v1429_v20 = vld [vmem:[%s2140_s1 + $0x54] ss:$8 sps:$4 sm:$0xff]   ;;  %v1433_v22 = vld [vmem:[%s2140_s1 + $0x50] ss:$8 sps:$4 sm:$0xff]  }
   0x8   :  { %986 = vmatpush1.bf16.msra.mxu0 %v1410_v7  ;;  %834 = vmatprep.subr.bf16.mxu1 %v1411_v8  ;;  %v1428_v19 = vld [vmem:[%s2140_s1 + $0x140] ss:$8 sps:$4 sm:$0xff]   ;;  %v1431_v21 = vld [vmem:[%s2140_s1 + $0x154] ss:$8 sps:$4 sm:$0xff]   ;;  %v1434_v23 = vld [vmem:[%s2140_s1 + $0x150] ss:$8 sps:$4 sm:$0xff]  }
   0x9   :  { %987 = vmatprep.subr.bf16.mxu0 %v1413_v9  ;;  %v1435_v24 = vld [vmem:[%s2140_s1 + $0x64] ss:$8 sps:$4 sm:$0xff]   ;;  %v1439_v27 = vld [vmem:[%s2140_s1 + $0x60] ss:$8 sps:$4 sm:$0xff]   ;;  %v1441_v29 = vld [vmem:[%s2140_s1 + $0x74] ss:$8 sps:$4 sm:$0xff]  }
   0xa   :  { %v1437_v25 = vld [vmem:[%s2140_s1 + $0x164] ss:$8 sps:$4 sm:$0xff]   ;;  %v1440_v28 = vld [vmem:[%s2140_s1 + $0x160] ss:$8 sps:$4 sm:$0xff]   ;;  %v1443_v30 = vld [vmem:[%s2140_s1 + $0x174] ss:$8 sps:$4 sm:$0xff]  }
   0xb   :  { %835 = vmatpush1.bf16.msra.mxu1 %v1415_v10  ;;  %v1445_v31 = vld [vmem:[%s2140_s1 + $0x70] ss:$8 sps:$4 sm:$0xff]   ;;  %v1447_v33 = vld [vmem:[%s2140_s1 + $0x84] ss:$8 sps:$4 sm:$0xff]   ;;  %v1451_v35 = vld [vmem:[%s2140_s1 + $0x80] ss:$8 sps:$4 sm:$0xff]  }
   0xc   :  { %988 = vmatpush1.bf16.msra.mxu0 %v1416_v11  ;;  %836 = vmatprep.subr.bf16.mxu1 %v1417_v12  ;;  %v1446_v32 = vld [vmem:[%s2140_s1 + $0x170] ss:$8 sps:$4 sm:$0xff]   ;;  %v1449_v34 = vld [vmem:[%s2140_s1 + $0x184] ss:$8 sps:$4 sm:$0xff]   ;;  %v1452_v36 = vld [vmem:[%s2140_s1 + $0x180] ss:$8 sps:$4 sm:$0xff]  }
   0xd   :  { %989 = vmatprep.subr.bf16.mxu0 %v1419_v13  ;;  %v1453_v37 = vld [vmem:[%s2140_s1 + $0x94] ss:$8 sps:$4 sm:$0xff]   ;;  %v1457_v39 = vld [vmem:[%s2140_s1 + $0x90] ss:$8 sps:$4 sm:$0xff]   ;;  %v1459_v41 = vld [vmem:[%s2140_s1 + $0xa4] ss:$8 sps:$4 sm:$0xff]  }
   0xe   :  { %v1455_v38 = vld [vmem:[%s2140_s1 + $0x194] ss:$8 sps:$4 sm:$0xff]   ;;  %v1458_v40 = vld [vmem:[%s2140_s1 + $0x190] ss:$8 sps:$4 sm:$0xff]   ;;  %v1461_v42 = vld [vmem:[%s2140_s1 + $0x1a4] ss:$8 sps:$4 sm:$0xff]  }
   0xf   :  { %837 = vmatpush1.bf16.msra.mxu1 %v1421_v14  ;;  %v1463_v43 = vld [vmem:[%s2140_s1 + $0xa0] ss:$8 sps:$4 sm:$0xff]   ;;  %v1465_v45 = vld [vmem:[%s2140_s1 + $0xb4] ss:$8 sps:$4 sm:$0xff]   ;;  %v1469_v47 = vld [vmem:[%s2140_s1 + $0xb0] ss:$8 sps:$4 sm:$0xff]  }
  0x10   :  { %990 = vmatpush1.bf16.msra.mxu0 %v1422_v15  ;;  %838 = vmatprep.subr.bf16.mxu1 %v1423_v16  ;;  %v1464_v44 = vld [vmem:[%s2140_s1 + $0x1a0] ss:$8 sps:$4 sm:$0xff]   ;;  %v1467_v46 = vld [vmem:[%s2140_s1 + $0x1b4] ss:$8 sps:$4 sm:$0xff]   ;;  %v1470_v48 = vld [vmem:[%s2140_s1 + $0x1b0] ss:$8 sps:$4 sm:$0xff]  }
  0x11   :  { %991 = vmatprep.subr.bf16.mxu0 %v1425_v17  ;;  %v1471_v49 = vld [vmem:[%s2140_s1 + $0xc4] ss:$8 sps:$4 sm:$0xff]   ;;  %v1475_v53 = vld [vmem:[%s2140_s1 + $0xc0] ss:$8 sps:$4 sm:$0xff]   ;;  %v1477_v55 = vld [vmem:[%s2140_s1 + $0xd4] ss:$8 sps:$4 sm:$0xff]  }
  0x12   :  { %v1497_v50 = vld [vmem:[%s2141_s0 + $0x4] ss:$16 sps:$4 sm:$0xff]   ;;  %v1500_v52 = vld [vmem:[%s2141_s0 + $0xc] ss:$16 sps:$4 sm:$0xff]   ;;  %v1476_v54 = vld [vmem:[%s2140_s1 + $0x1c0] ss:$8 sps:$4 sm:$0xff]  }
  0x13   :  { %839 = vmatpush1.bf16.msra.mxu1 %v1427_v18  ;;  %v1473_v51 = vld [vmem:[%s2140_s1 + $0x1c4] ss:$8 sps:$4 sm:$0xff]   ;;  %862 = vmatprep.mubr.bf16.mxu1 %v1497_v50  ;;  %v1479_v56 = vld [vmem:[%s2140_s1 + $0x1d4] ss:$8 sps:$4 sm:$0xff]   ;;  %v1481_v57 = vld [vmem:[%s2140_s1 + $0xd0] ss:$8 sps:$4 sm:$0xff]  }
  0x14   :  { %992 = vmatpush1.bf16.msra.mxu0 %v1428_v19  ;;  %840 = vmatprep.subr.bf16.mxu1 %v1429_v20  ;;  %v1482_v58 = vld [vmem:[%s2140_s1 + $0x1d0] ss:$8 sps:$4 sm:$0xff]   ;;  %v1483_v59 = vld [vmem:[%s2140_s1 + $0xe4] ss:$8 sps:$4 sm:$0xff]   ;;  %v1487_v61 = vld [vmem:[%s2140_s1 + $0xe0] ss:$8 sps:$4 sm:$0xff]  }
  0x15   :  { %993 = vmatprep.subr.bf16.mxu0 %v1431_v21  ;;  %1015 = vmatprep.mubr.bf16.mxu0 %v1500_v52  ;;  %v1485_v60 = vld [vmem:[%s2140_s1 + $0x1e4] ss:$8 sps:$4 sm:$0xff]   ;;  %v1488_v62 = vld [vmem:[%s2140_s1 + $0x1e0] ss:$8 sps:$4 sm:$0xff]   ;;  %v1489_v63 = vld [vmem:[%s2140_s1 + $0xf4] ss:$8 sps:$4 sm:$0xff]  }
  0x16   :  { %v1491_v0 = vld [vmem:[%s2140_s1 + $0x1f4] ss:$8 sps:$4 sm:$0xff]   ;;  %v1493_v1 = vld [vmem:[%s2140_s1 + $0xf0] ss:$8 sps:$4 sm:$0xff]   ;;  %v126_v11 = vld [vmem:[%s2142_s2] sm:$0xff] }
  0x17   :  { %841 = vmatpush1.bf16.msra.mxu1 %v1433_v22  ;;  %v1494_v2 = vld [vmem:[%s2140_s1 + $0x1f0] ss:$8 sps:$4 sm:$0xff]   ;;  %v1501_v5 = vld [vmem:[%s2141_s0 + $0x24] ss:$16 sps:$4 sm:$0xff]   ;;  %v1503_v6 = vld [vmem:[%s2141_s0 + $0x2c] ss:$16 sps:$4 sm:$0xff]   ;;  %152 = vperm.xlu0 %1397, %v126_v11  }
  0x18   :  { %994 = vmatpush1.bf16.msra.mxu0 %v1434_v23  ;;  %842 = vmatprep.subr.bf16.mxu1 %v1435_v24  ;;  %v1495_v3 = vld [vmem:[%s2141_s0] ss:$16 sps:$4 sm:$0xff]   ;;  %v1498_v4 = vld [vmem:[%s2141_s0 + $0x8] ss:$16 sps:$4 sm:$0xff]   ;;  %v1507_v9 = vld [vmem:[%s2141_s0 + $0x44] ss:$16 sps:$4 sm:$0xff]  }
  0x19   :  { %995 = vmatprep.subr.bf16.mxu0 %v1437_v25  ;;  %v1505_v7 = vld [vmem:[%s2141_s0 + $0x20] ss:$16 sps:$4 sm:$0xff]   ;;  %v1506_v8 = vld [vmem:[%s2141_s0 + $0x28] ss:$16 sps:$4 sm:$0xff]   ;;  %v1509_v10 = vld [vmem:[%s2141_s0 + $0x4c] ss:$16 sps:$4 sm:$0xff]  }
  0x1a   :  { %v128_v12 = vld [vmem:[%s2142_s2 + $0x10] sm:$0xff]  ;;  %v127_v13 = vld [vmem:[%s2142_s2 + $0x8] sm:$0xff]  ;;  %v129_v14 = vld [vmem:[%s2142_s2 + $0x18] sm:$0xff] }
  0x1b   :  { %843 = vmatpush1.bf16.msra.mxu1 %v1439_v27  ;;  %162 = vperm.xlu1 %1398, %v128_v12   ;;  %v131_v15 = vld [vmem:[%s2142_s2 + $0x28] sm:$0xff]  ;;  %v130_v16 = vld [vmem:[%s2142_s2 + $0x20] sm:$0xff]  ;;  %v133_v21 = vld [vmem:[%s2142_s2 + $0x38] sm:$0xff] }
  0x1c   :  { %996 = vmatpush1.bf16.msra.mxu0 %v1440_v28  ;;  %844 = vmatprep.subr.bf16.mxu1 %v1441_v29  ;;  %v1511_v17 = vld [vmem:[%s2141_s0 + $0x40] ss:$16 sps:$4 sm:$0xff]   ;;  %v1512_v18 = vld [vmem:[%s2141_s0 + $0x48] ss:$16 sps:$4 sm:$0xff]   ;;  %v1513_v19 = vld [vmem:[%s2141_s0 + $0x64] ss:$16 sps:$4 sm:$0xff]  }
  0x1d   :  { %997 = vmatprep.subr.bf16.mxu0 %v1443_v30  ;;  %157 = vperm.xlu0 %1397, %v127_v13   ;;  %v1515_v20 = vld [vmem:[%s2141_s0 + $0x6c] ss:$16 sps:$4 sm:$0xff]   ;;  %v132_v22 = vld [vmem:[%s2142_s2 + $0x30] sm:$0xff]  ;;  %v134_v24 = vld [vmem:[%s2142_s2 + $0x40] sm:$0xff] }
  0x1e   :  { %v135_v23 = vld [vmem:[%s2142_s2 + $0x48] sm:$0xff]  ;;  %v1517_v25 = vld [vmem:[%s2141_s0 + $0x60] ss:$16 sps:$4 sm:$0xff]   ;;  %v1519_v27 = vld [vmem:[%s2141_s0 + $0x84] ss:$16 sps:$4 sm:$0xff]  }
  0x1f   :  { %845 = vmatpush1.bf16.msra.mxu1 %v1445_v31  ;;  %167 = vperm.xlu1 %1398, %v129_v14   ;;  %v1518_v26 = vld [vmem:[%s2141_s0 + $0x68] ss:$16 sps:$4 sm:$0xff]   ;;  %v1521_v28 = vld [vmem:[%s2141_s0 + $0x8c] ss:$16 sps:$4 sm:$0xff]   ;;  %v136_v30 = vld [vmem:[%s2142_s2 + $0x50] sm:$0xff] }
  0x20   :  { %998 = vmatpush1.bf16.msra.mxu0 %v1446_v32  ;;  %846 = vmatprep.subr.bf16.mxu1 %v1447_v33  ;;  %v137_v29 = vld [vmem:[%s2142_s2 + $0x58] sm:$0xff]  ;;  %v139_v31 = vld [vmem:[%s2142_s2 + $0x68] sm:$0xff]  ;;  %v138_v32 = vld [vmem:[%s2142_s2 + $0x60] sm:$0xff] }
  0x21   :  { %999 = vmatprep.subr.bf16.mxu0 %v1449_v34  ;;  %172 = vperm.xlu0 %1397, %v130_v16   ;;  %v1523_v33 = vld [vmem:[%s2141_s0 + $0x80] ss:$16 sps:$4 sm:$0xff]   ;;  %v1524_v34 = vld [vmem:[%s2141_s0 + $0x88] ss:$16 sps:$4 sm:$0xff]   ;;  %v1539_v52 = vld [vmem:[%s2141_s0 + $0xec] ss:$16 sps:$4 sm:$0xff]  }
  0x22   :  { %v1536_v50 = vld [vmem:[%s2141_s0 + $0xc8] ss:$16 sps:$4 sm:$0xff]  }
  0x23   :  { %847 = vmatpush1.bf16.msra.mxu1 %v1451_v35  ;;  %177 = vperm.xlu1 %1398, %v131_v15   ;;  %v1525_v35 = vld [vmem:[%s2141_s0 + $0xa4] ss:$16 sps:$4 sm:$0xff]  }
  0x24   :  { %1000 = vmatpush1.bf16.msra.mxu0 %v1452_v36  ;;  %848 = vmatprep.subr.bf16.mxu1 %v1453_v37  ;;  %v1527_v36 = vld [vmem:[%s2141_s0 + $0xac] ss:$16 sps:$4 sm:$0xff]  }
  0x25   :  { %1001 = vmatprep.subr.bf16.mxu0 %v1455_v38  ;;  %182 = vperm.xlu0 %1397, %v132_v22   ;;  %v141_v37 = vld [vmem:[%s2142_s2 + $0x78] sm:$0xff]  ;;  %v140_v38 = vld [vmem:[%s2142_s2 + $0x70] sm:$0xff] }
  0x27   :  { %849 = vmatpush1.bf16.msra.mxu1 %v1457_v39  ;;  %187 = vperm.xlu1 %1398, %v133_v21   ;;  %v143_v39 = vld [vmem:[%s2142_s2 + $0x88] sm:$0xff] }
  0x28   :  { %1002 = vmatpush1.bf16.msra.mxu0 %v1458_v40  ;;  %850 = vmatprep.subr.bf16.mxu1 %v1459_v41  ;;  %v142_v40 = vld [vmem:[%s2142_s2 + $0x80] sm:$0xff] }
  0x29   :  { %1003 = vmatprep.subr.bf16.mxu0 %v1461_v42  ;;  %192 = vperm.xlu0 %1397, %v134_v24   ;;  %v1529_v41 = vld [vmem:[%s2141_s0 + $0xa0] ss:$16 sps:$4 sm:$0xff]   ;;  %v1530_v42 = vld [vmem:[%s2141_s0 + $0xa8] ss:$16 sps:$4 sm:$0xff]  }
  0x2b   :  { %851 = vmatpush1.bf16.msra.mxu1 %v1463_v43  ;;  %197 = vperm.xlu1 %1398, %v135_v23   ;;  %v1531_v43 = vld [vmem:[%s2141_s0 + $0xc4] ss:$16 sps:$4 sm:$0xff]  }
  0x2c   :  { %1004 = vmatpush1.bf16.msra.mxu0 %v1464_v44  ;;  %852 = vmatprep.subr.bf16.mxu1 %v1465_v45  ;;  %v1533_v44 = vld [vmem:[%s2141_s0 + $0xcc] ss:$16 sps:$4 sm:$0xff]  }
  0x2d   :  { %1005 = vmatprep.subr.bf16.mxu0 %v1467_v46  ;;  %202 = vperm.xlu0 %1397, %v136_v30   ;;  %v145_v45 = vld [vmem:[%s2142_s2 + $0x98] sm:$0xff]  ;;  %v144_v46 = vld [vmem:[%s2142_s2 + $0x90] sm:$0xff] }
  0x2f   :  { %853 = vmatpush1.bf16.msra.mxu1 %v1469_v47  ;;  %207 = vperm.xlu1 %1398, %v137_v29   ;;  %v147_v47 = vld [vmem:[%s2142_s2 + $0xa8] sm:$0xff] }
  0x30   :  { %1006 = vmatpush1.bf16.msra.mxu0 %v1470_v48  ;;  %854 = vmatprep.subr.bf16.mxu1 %v1471_v49  ;;  %v146_v48 = vld [vmem:[%s2142_s2 + $0xa0] sm:$0xff] }
  0x31   :  { %1007 = vmatprep.subr.bf16.mxu0 %v1473_v51  ;;  %212 = vperm.xlu0 %1397, %v138_v32   ;;  %v1535_v49 = vld [vmem:[%s2141_s0 + $0xc0] ss:$16 sps:$4 sm:$0xff]   ;;  %v1537_v51 = vld [vmem:[%s2141_s0 + $0xe4] ss:$16 sps:$4 sm:$0xff]  }
  0x33   :  { %855 = vmatpush1.bf16.msra.mxu1 %v1475_v53  ;;  %217 = vperm.xlu1 %1398, %v139_v31   ;;  %v149_v53 = vld [vmem:[%s2142_s2 + $0xb8] sm:$0xff] }
  0x34   :  { %1008 = vmatpush1.bf16.msra.mxu0 %v1476_v54  ;;  %856 = vmatprep.subr.bf16.mxu1 %v1477_v55  ;;  %v148_v54 = vld [vmem:[%s2142_s2 + $0xb0] sm:$0xff] }
  0x35   :  { %1009 = vmatprep.subr.bf16.mxu0 %v1479_v56  ;;  %222 = vperm.xlu0 %1397, %v140_v38   ;;  %v1541_v55 = vld [vmem:[%s2141_s0 + $0xe0] ss:$16 sps:$4 sm:$0xff]   ;;  %v1542_v56 = vld [vmem:[%s2141_s0 + $0xe8] ss:$16 sps:$4 sm:$0xff]  }
  0x37   :  { %857 = vmatpush1.bf16.msra.mxu1 %v1481_v57  ;;  %227 = vperm.xlu1 %1398, %v141_v37   ;;  %v1543_v57 = vld [vmem:[%s2141_s0 + $0x104] ss:$16 sps:$4 sm:$0xff]  }
  0x38   :  { %1010 = vmatpush1.bf16.msra.mxu0 %v1482_v58  ;;  %858 = vmatprep.subr.bf16.mxu1 %v1483_v59  ;;  %v1545_v58 = vld [vmem:[%s2141_s0 + $0x10c] ss:$16 sps:$4 sm:$0xff]   ;;  %v1547_v59 = vld [vmem:[%s2141_s0 + $0x100] ss:$16 sps:$4 sm:$0xff]  }
  0x39   :  { %1011 = vmatprep.subr.bf16.mxu0 %v1485_v60  ;;  %232 = vperm.xlu0 %1397, %v142_v40   ;;  %v1548_v60 = vld [vmem:[%s2141_s0 + $0x108] ss:$16 sps:$4 sm:$0xff]  }
  0x3b   :  { %859 = vmatpush1.bf16.msra.mxu1 %v1487_v61  ;;  %237 = vperm.xlu1 %1398, %v143_v39   ;;  %v1549_v61 = vld [vmem:[%s2141_s0 + $0x124] ss:$16 sps:$4 sm:$0xff]  }
  0x3c   :  { %1012 = vmatpush1.bf16.msra.mxu0 %v1488_v62  ;;  %860 = vmatprep.subr.bf16.mxu1 %v1489_v63  ;;  %v1551_v62 = vld [vmem:[%s2141_s0 + $0x12c] ss:$16 sps:$4 sm:$0xff]   ;;  %v1553_v63 = vld [vmem:[%s2141_s0 + $0x120] ss:$16 sps:$4 sm:$0xff]  }
  0x3d   :  { %1013 = vmatprep.subr.bf16.mxu0 %v1491_v0  ;;  %242 = vperm.xlu0 %1397, %v144_v46   ;;  %v1554_v0 = vld [vmem:[%s2141_s0 + $0x128] ss:$16 sps:$4 sm:$0xff]  }
  0x3f   :  { %861 = vmatpush1.bf16.msra.mxu1 %v1493_v1  ;;  %247 = vperm.xlu1 %1398, %v145_v45   ;;  %v1555_v1 = vld [vmem:[%s2141_s0 + $0x144] ss:$16 sps:$4 sm:$0xff]  }
  0x40   :  { %1014 = vmatpush1.bf16.msra.mxu0 %v1494_v2  ;;  %v1557_v2 = vld [vmem:[%s2141_s0 + $0x14c] ss:$16 sps:$4 sm:$0xff]  }
  0x41   :  { %252 = vperm.xlu0 %1397, %v146_v48  }
  0x42   :  { %863 = vmatmul.mubr.bf16.vlgmr.msra.gmra.mrb[0].mxu1 %v1495_v3  ;;  %v1559_v3 = vld [vmem:[%s2141_s0 + $0x140] ss:$16 sps:$4 sm:$0xff]  }
  0x43   :  { %1016 = vmatmul.mubr.bf16.vlgmr.msra.gmra.mrb[0].mxu0 %v1498_v4  ;;  %872 = vmatprep.mubr.bf16.mxu1 %v1501_v5  ;;  %v1560_v4 = vld [vmem:[%s2141_s0 + $0x148] ss:$16 sps:$4 sm:$0xff]   ;;  %v1561_v5 = vld [vmem:[%s2141_s0 + $0x164] ss:$16 sps:$4 sm:$0xff]  }
  0x44   :  { %1025 = vmatprep.mubr.bf16.mxu0 %v1503_v6  ;;  %257 = vperm.xlu1 %1398, %v147_v47   ;;  %v1563_v6 = vld [vmem:[%s2141_s0 + $0x16c] ss:$16 sps:$4 sm:$0xff]  }
  0x45   :  { %262 = vperm.xlu0 %1397, %v148_v54  }
  0x48   :  { %267 = vperm.xlu1 %1398, %v149_v53  }
  0x4a   :  { %873 = vmatmul.mubr.bf16.gmra.mrb[4].mxu1 %v1505_v7  ;;  %v1565_v7 = vld [vmem:[%s2141_s0 + $0x160] ss:$16 sps:$4 sm:$0xff]  }
  0x4b   :  { %1026 = vmatmul.mubr.bf16.gmra.mrb[4].mxu0 %v1506_v8  ;;  %882 = vmatprep.mubr.bf16.mxu1 %v1507_v9  ;;  %v1566_v8 = vld [vmem:[%s2141_s0 + $0x168] ss:$16 sps:$4 sm:$0xff]  }
  0x4c   :  { %1035 = vmatprep.mubr.bf16.mxu0 %v1509_v10 }
  0x52   :  { %883 = vmatmul.mubr.bf16.gmra.mrb[8].mxu1 %v1511_v17 }
  0x53   :  { %1036 = vmatmul.mubr.bf16.gmra.mrb[8].mxu0 %v1512_v18  ;;  %892 = vmatprep.mubr.bf16.mxu1 %v1513_v19 }
  0x54   :  { %1045 = vmatprep.mubr.bf16.mxu0 %v1515_v20 }
  0x5a   :  { %893 = vmatmul.mubr.bf16.gmra.mrb[12].mxu1 %v1517_v25 }
  0x5b   :  { %1046 = vmatmul.mubr.bf16.gmra.mrb[12].mxu0 %v1518_v26  ;;  %902 = vmatprep.mubr.bf16.mxu1 %v1519_v27 }
  0x5c   :  { %1055 = vmatprep.mubr.bf16.mxu0 %v1521_v28 }
  0x62   :  { %903 = vmatmul.mubr.bf16.gmra.mrb[16].mxu1 %v1523_v33 }
  0x63   :  { %1056 = vmatmul.mubr.bf16.gmra.mrb[16].mxu0 %v1524_v34  ;;  %912 = vmatprep.mubr.bf16.mxu1 %v1525_v35 }
  0x64   :  { %1065 = vmatprep.mubr.bf16.mxu0 %v1527_v36 }
  0x6a   :  { %913 = vmatmul.mubr.bf16.gmra.mrb[20].mxu1 %v1529_v41 }
  0x6b   :  { %1066 = vmatmul.mubr.bf16.gmra.mrb[20].mxu0 %v1530_v42  ;;  %922 = vmatprep.mubr.bf16.mxu1 %v1531_v43 }
  0x6c   :  { %1075 = vmatprep.mubr.bf16.mxu0 %v1533_v44 }
  0x72   :  { %923 = vmatmul.mubr.bf16.gmra.mrb[24].mxu1 %v1535_v49 }
  0x73   :  { %1076 = vmatmul.mubr.bf16.gmra.mrb[24].mxu0 %v1536_v50  ;;  %932 = vmatprep.mubr.bf16.mxu1 %v1537_v51 }
  0x74   :  { %1085 = vmatprep.mubr.bf16.mxu0 %v1539_v52 }
  0x7a   :  { %933 = vmatmul.mubr.bf16.gmra.mrb[28].mxu1 %v1541_v55 }
  0x7b   :  { %1086 = vmatmul.mubr.bf16.gmra.mrb[28].mxu0 %v1542_v56  ;;  %942 = vmatprep.mubr.bf16.mxu1 %v1543_v57 }
  0x7c   :  { %1095 = vmatprep.mubr.bf16.mxu0 %v1545_v58 }
  0x82   :  { %943 = vmatmul.mubr.bf16.gmra.mrb[32].mxu1 %v1547_v59 }
  0x83   :  { %1096 = vmatmul.mubr.bf16.gmra.mrb[32].mxu0 %v1548_v60  ;;  %952 = vmatprep.mubr.bf16.mxu1 %v1549_v61 }
  0x84   :  { %1105 = vmatprep.mubr.bf16.mxu0 %v1551_v62 }
  0x8a   :  { %953 = vmatmul.mubr.bf16.gmra.mrb[36].mxu1 %v1553_v63 }
  0x8b   :  { %1106 = vmatmul.mubr.bf16.gmra.mrb[36].mxu0 %v1554_v0  ;;  %962 = vmatprep.mubr.bf16.mxu1 %v1555_v1 }
  0x8c   :  { %1115 = vmatprep.mubr.bf16.mxu0 %v1557_v2 }
  0x92   :  { %963 = vmatmul.mubr.bf16.gmra.mrb[40].mxu1 %v1559_v3 }
  0x93   :  { %1116 = vmatmul.mubr.bf16.gmra.mrb[40].mxu0 %v1560_v4  ;;  %972 = vmatprep.mubr.bf16.mxu1 %v1561_v5 }
  0x94   :  { %1125 = vmatprep.mubr.bf16.mxu0 %v1563_v6 }
  0x96   :  { %v153_v9 = vpop.permute.xlu0 %152 }
  0x9a   :  { %973 = vmatmul.mubr.bf16.gmra.mrb[44].mxu1 %v1565_v7  ;;  %v163_v11 = vpop.permute.xlu1 %162 }
  0x9b   :  { %1126 = vmatmul.mubr.bf16.gmra.mrb[44].mxu0 %v1566_v8 }
  0x9c   :  { %v158_v10 = vpop.permute.xlu0 %157 }
  0x9e   :  { %v168_v28 = vpop.permute.xlu1 %167 }
  0xa0   :  { %v173_v46 = vpop.permute.xlu0 %172 }
  0xa2   :  { %v178_v45 = vpop.permute.xlu1 %177 }
  0xa4   :  { %v183_v0 = vpop.permute.xlu0 %182 }
  0xa6   :  { %v188_v63 = vpop.permute.xlu1 %187 }
 0x115   :  { %v864_v12 = vpop.f32.mrb[0].mxu1 }
 0x116   :  { %v1017_v13 = vpop.f32.mrb[0].mxu0  ;;  %v865_v14 = vadd.f32 %v864_v12, %v153_v9  ;;  %v866_v15 = vpop.f32.mrb[1].mxu1 }
 0x117   :  { %v1019_v16 = vpop.f32.mrb[1].mxu0  ;;  %v867_v17 = vadd.f32 %v866_v15, %v153_v9  ;;  %v868_v18 = vpop.f32.mrb[2].mxu1 }
 0x118   :  { %v1021_v19 = vpop.f32.mrb[2].mxu0  ;;  %v1018_v20 = vadd.f32 %v1017_v13, %v865_v14  ;;  %v869_v21 = vadd.f32 %v868_v18, %v158_v10  ;;  %v870_v22 = vpop.f32.mrb[3].mxu1 }
 0x119   :  { %v1023_v23 = vpop.f32.mrb[3].mxu0  ;;  %v1020_v24 = vadd.f32 %v1019_v16, %v867_v17  ;;  %v871_v25 = vadd.f32 %v870_v22, %v158_v10  ;;  %v198_v17 = vpop.permute.xlu1 %197 }
 0x11a   :  { %1136 = vst [vmem:[%s2143_s3] sm:$0xff] %v1018_v20  ;;  %v1022_v26 = vadd.f32 %v1021_v19, %v869_v21  ;;  %v193_v18 = vpop.permute.xlu0 %192 }
 0x11b   :  { %1137 = vst [vmem:[%s2143_s3 + $0x8] sm:$0xff] %v1020_v24  ;;  %v1024_v27 = vadd.f32 %v1023_v23, %v871_v25 }
 0x11c   :  { %1138 = vst [vmem:[%s2143_s3 + $0x10] sm:$0xff] %v1022_v26 }
 0x11d   :  { %1139 = vst [vmem:[%s2143_s3 + $0x18] sm:$0xff] %v1024_v27  ;;  %v874_v29 = vpop.f32.mrb[4].mxu1 }
 0x11e   :  { %v1027_v30 = vpop.f32.mrb[4].mxu0  ;;  %v875_v31 = vadd.f32 %v874_v29, %v163_v11  ;;  %v876_v32 = vpop.f32.mrb[5].mxu1 }
 0x11f   :  { %v1029_v33 = vpop.f32.mrb[5].mxu0  ;;  %v877_v34 = vadd.f32 %v876_v32, %v163_v11  ;;  %v878_v35 = vpop.f32.mrb[6].mxu1 }
 0x120   :  { %v1031_v36 = vpop.f32.mrb[6].mxu0  ;;  %v1028_v37 = vadd.f32 %v1027_v30, %v875_v31  ;;  %v879_v38 = vadd.f32 %v878_v35, %v168_v28  ;;  %v880_v39 = vpop.f32.mrb[7].mxu1 }
 0x121   :  { %v1033_v40 = vpop.f32.mrb[7].mxu0  ;;  %v1030_v41 = vadd.f32 %v1029_v33, %v877_v34  ;;  %v881_v42 = vadd.f32 %v880_v39, %v168_v28  ;;  %v208_v35 = vpop.permute.xlu1 %207 }
 0x122   :  { %1140 = vst [vmem:[%s2143_s3 + $0x20] sm:$0xff] %v1028_v37  ;;  %v1032_v43 = vadd.f32 %v1031_v36, %v879_v38  ;;  %v203_v36 = vpop.permute.xlu0 %202 }
 0x123   :  { %1141 = vst [vmem:[%s2143_s3 + $0x28] sm:$0xff] %v1030_v41  ;;  %v1034_v44 = vadd.f32 %v1033_v40, %v881_v42 }
 0x124   :  { %1142 = vst [vmem:[%s2143_s3 + $0x30] sm:$0xff] %v1032_v43 }
 0x125   :  { %1143 = vst [vmem:[%s2143_s3 + $0x38] sm:$0xff] %v1034_v44  ;;  %v884_v47 = vpop.f32.mrb[8].mxu1 }
 0x126   :  { %v1037_v48 = vpop.f32.mrb[8].mxu0  ;;  %v885_v49 = vadd.f32 %v884_v47, %v173_v46  ;;  %v886_v50 = vpop.f32.mrb[9].mxu1 }
 0x127   :  { %v1039_v51 = vpop.f32.mrb[9].mxu0  ;;  %v887_v52 = vadd.f32 %v886_v50, %v173_v46  ;;  %v888_v53 = vpop.f32.mrb[10].mxu1 }
 0x128   :  { %v1041_v54 = vpop.f32.mrb[10].mxu0  ;;  %v1038_v55 = vadd.f32 %v1037_v48, %v885_v49  ;;  %v889_v56 = vadd.f32 %v888_v53, %v178_v45  ;;  %v890_v57 = vpop.f32.mrb[11].mxu1 }
 0x129   :  { %v1043_v58 = vpop.f32.mrb[11].mxu0  ;;  %v1040_v59 = vadd.f32 %v1039_v51, %v887_v52  ;;  %v891_v60 = vadd.f32 %v890_v57, %v178_v45  ;;  %v218_v53 = vpop.permute.xlu1 %217 }
 0x12a   :  { %1144 = vst [vmem:[%s2143_s3 + $0x40] sm:$0xff] %v1038_v55  ;;  %v1042_v61 = vadd.f32 %v1041_v54, %v889_v56  ;;  %v213_v54 = vpop.permute.xlu0 %212 }
 0x12b   :  { %1145 = vst [vmem:[%s2143_s3 + $0x48] sm:$0xff] %v1040_v59  ;;  %v1044_v62 = vadd.f32 %v1043_v58, %v891_v60 }
 0x12c   :  { %1146 = vst [vmem:[%s2143_s3 + $0x50] sm:$0xff] %v1042_v61 }
 0x12d   :  { %1147 = vst [vmem:[%s2143_s3 + $0x58] sm:$0xff] %v1044_v62  ;;  %v894_v1 = vpop.f32.mrb[12].mxu1 }
 0x12e   :  { %v1047_v2 = vpop.f32.mrb[12].mxu0  ;;  %v895_v3 = vadd.f32 %v894_v1, %v183_v0  ;;  %v896_v4 = vpop.f32.mrb[13].mxu1 }
 0x12f   :  { %v1049_v5 = vpop.f32.mrb[13].mxu0  ;;  %v897_v6 = vadd.f32 %v896_v4, %v183_v0  ;;  %v898_v7 = vpop.f32.mrb[14].mxu1 }
 0x130   :  { %v1051_v8 = vpop.f32.mrb[14].mxu0  ;;  %v1048_v9 = vadd.f32 %v1047_v2, %v895_v3  ;;  %v899_v10 = vadd.f32 %v898_v7, %v188_v63  ;;  %v900_v11 = vpop.f32.mrb[15].mxu1 }
 0x131   :  { %v1053_v12 = vpop.f32.mrb[15].mxu0  ;;  %v1050_v13 = vadd.f32 %v1049_v5, %v897_v6  ;;  %v901_v14 = vadd.f32 %v900_v11, %v188_v63  ;;  %v228_v7 = vpop.permute.xlu1 %227 }
 0x132   :  { %1148 = vst [vmem:[%s2143_s3 + $0x60] sm:$0xff] %v1048_v9  ;;  %v1052_v15 = vadd.f32 %v1051_v8, %v899_v10  ;;  %v223_v8 = vpop.permute.xlu0 %222 }
 0x133   :  { %1149 = vst [vmem:[%s2143_s3 + $0x68] sm:$0xff] %v1050_v13  ;;  %v1054_v16 = vadd.f32 %v1053_v12, %v901_v14 }
 0x134   :  { %1150 = vst [vmem:[%s2143_s3 + $0x70] sm:$0xff] %v1052_v15 }
 0x135   :  { %1151 = vst [vmem:[%s2143_s3 + $0x78] sm:$0xff] %v1054_v16  ;;  %v904_v19 = vpop.f32.mrb[16].mxu1 }
 0x136   :  { %v1057_v20 = vpop.f32.mrb[16].mxu0  ;;  %v905_v21 = vadd.f32 %v904_v19, %v193_v18  ;;  %v906_v22 = vpop.f32.mrb[17].mxu1 }
 0x137   :  { %v1059_v23 = vpop.f32.mrb[17].mxu0  ;;  %v907_v24 = vadd.f32 %v906_v22, %v193_v18  ;;  %v908_v25 = vpop.f32.mrb[18].mxu1 }
 0x138   :  { %v1061_v26 = vpop.f32.mrb[18].mxu0  ;;  %v1058_v27 = vadd.f32 %v1057_v20, %v905_v21  ;;  %v909_v28 = vadd.f32 %v908_v25, %v198_v17  ;;  %v910_v29 = vpop.f32.mrb[19].mxu1 }
 0x139   :  { %v1063_v30 = vpop.f32.mrb[19].mxu0  ;;  %v1060_v31 = vadd.f32 %v1059_v23, %v907_v24  ;;  %v911_v32 = vadd.f32 %v910_v29, %v198_v17  ;;  %v238_v25 = vpop.permute.xlu1 %237 }
 0x13a   :  { %1152 = vst [vmem:[%s2143_s3 + $0x80] sm:$0xff] %v1058_v27  ;;  %v1062_v33 = vadd.f32 %v1061_v26, %v909_v28  ;;  %v233_v26 = vpop.permute.xlu0 %232 }
 0x13b   :  { %1153 = vst [vmem:[%s2143_s3 + $0x88] sm:$0xff] %v1060_v31  ;;  %v1064_v34 = vadd.f32 %v1063_v30, %v911_v32 }
 0x13c   :  { %1154 = vst [vmem:[%s2143_s3 + $0x90] sm:$0xff] %v1062_v33 }
 0x13d   :  { %1155 = vst [vmem:[%s2143_s3 + $0x98] sm:$0xff] %v1064_v34  ;;  %v914_v37 = vpop.f32.mrb[20].mxu1 }
 0x13e   :  { %v1067_v38 = vpop.f32.mrb[20].mxu0  ;;  %v915_v39 = vadd.f32 %v914_v37, %v203_v36  ;;  %v916_v40 = vpop.f32.mrb[21].mxu1 }
 0x13f   :  { %v1069_v41 = vpop.f32.mrb[21].mxu0  ;;  %v917_v42 = vadd.f32 %v916_v40, %v203_v36  ;;  %v918_v43 = vpop.f32.mrb[22].mxu1 }
 0x140   :  { %v1071_v44 = vpop.f32.mrb[22].mxu0  ;;  %v1068_v45 = vadd.f32 %v1067_v38, %v915_v39  ;;  %v919_v46 = vadd.f32 %v918_v43, %v208_v35  ;;  %v920_v47 = vpop.f32.mrb[23].mxu1 }
 0x141   :  { %v1073_v48 = vpop.f32.mrb[23].mxu0  ;;  %v1070_v49 = vadd.f32 %v1069_v41, %v917_v42  ;;  %v921_v50 = vadd.f32 %v920_v47, %v208_v35  ;;  %v248_v43 = vpop.permute.xlu1 %247 }
 0x142   :  { %1156 = vst [vmem:[%s2143_s3 + $0xa0] sm:$0xff] %v1068_v45  ;;  %v1072_v51 = vadd.f32 %v1071_v44, %v919_v46  ;;  %v243_v44 = vpop.permute.xlu0 %242 }
 0x143   :  { %1157 = vst [vmem:[%s2143_s3 + $0xa8] sm:$0xff] %v1070_v49  ;;  %v1074_v52 = vadd.f32 %v1073_v48, %v921_v50 }
 0x144   :  { %1158 = vst [vmem:[%s2143_s3 + $0xb0] sm:$0xff] %v1072_v51 }
 0x145   :  { %1159 = vst [vmem:[%s2143_s3 + $0xb8] sm:$0xff] %v1074_v52  ;;  %v924_v55 = vpop.f32.mrb[24].mxu1 }
 0x146   :  { %v1077_v56 = vpop.f32.mrb[24].mxu0  ;;  %v925_v57 = vadd.f32 %v924_v55, %v213_v54  ;;  %v926_v58 = vpop.f32.mrb[25].mxu1 }
 0x147   :  { %v1079_v59 = vpop.f32.mrb[25].mxu0  ;;  %v927_v60 = vadd.f32 %v926_v58, %v213_v54  ;;  %v928_v61 = vpop.f32.mrb[26].mxu1 }
 0x148   :  { %v1081_v62 = vpop.f32.mrb[26].mxu0  ;;  %v1078_v63 = vadd.f32 %v1077_v56, %v925_v57  ;;  %v929_v0 = vadd.f32 %v928_v61, %v218_v53  ;;  %v930_v1 = vpop.f32.mrb[27].mxu1 }
 0x149   :  { %v1083_v2 = vpop.f32.mrb[27].mxu0  ;;  %v1080_v3 = vadd.f32 %v1079_v59, %v927_v60  ;;  %v931_v4 = vadd.f32 %v930_v1, %v218_v53  ;;  %v258_v61 = vpop.permute.xlu1 %257 }
 0x14a   :  { %1160 = vst [vmem:[%s2143_s3 + $0xc0] sm:$0xff] %v1078_v63  ;;  %v1082_v5 = vadd.f32 %v1081_v62, %v929_v0  ;;  %v253_v62 = vpop.permute.xlu0 %252 }
 0x14b   :  { %1161 = vst [vmem:[%s2143_s3 + $0xc8] sm:$0xff] %v1080_v3  ;;  %v1084_v6 = vadd.f32 %v1083_v2, %v931_v4 }
 0x14c   :  { %1162 = vst [vmem:[%s2143_s3 + $0xd0] sm:$0xff] %v1082_v5 }
 0x14d   :  { %1163 = vst [vmem:[%s2143_s3 + $0xd8] sm:$0xff] %v1084_v6  ;;  %v934_v9 = vpop.f32.mrb[28].mxu1 }
 0x14e   :  { %v1087_v10 = vpop.f32.mrb[28].mxu0  ;;  %v935_v11 = vadd.f32 %v934_v9, %v223_v8  ;;  %v936_v12 = vpop.f32.mrb[29].mxu1 }
 0x14f   :  { %v1089_v13 = vpop.f32.mrb[29].mxu0  ;;  %v937_v14 = vadd.f32 %v936_v12, %v223_v8  ;;  %v938_v15 = vpop.f32.mrb[30].mxu1 }
 0x150   :  { %v1091_v16 = vpop.f32.mrb[30].mxu0  ;;  %v1088_v17 = vadd.f32 %v1087_v10, %v935_v11  ;;  %v939_v18 = vadd.f32 %v938_v15, %v228_v7  ;;  %v940_v19 = vpop.f32.mrb[31].mxu1 }
 0x151   :  { %v1093_v20 = vpop.f32.mrb[31].mxu0  ;;  %v1090_v21 = vadd.f32 %v1089_v13, %v937_v14  ;;  %v941_v22 = vadd.f32 %v940_v19, %v228_v7  ;;  %v268_v15 = vpop.permute.xlu1 %267 }
 0x152   :  { %1164 = vst [vmem:[%s2143_s3 + $0xe0] sm:$0xff] %v1088_v17  ;;  %v1092_v23 = vadd.f32 %v1091_v16, %v939_v18  ;;  %v263_v16 = vpop.permute.xlu0 %262 }
 0x153   :  { %1165 = vst [vmem:[%s2143_s3 + $0xe8] sm:$0xff] %v1090_v21  ;;  %v1094_v24 = vadd.f32 %v1093_v20, %v941_v22 }
 0x154   :  { %1166 = vst [vmem:[%s2143_s3 + $0xf0] sm:$0xff] %v1092_v23 }
 0x155   :  { %1167 = vst [vmem:[%s2143_s3 + $0xf8] sm:$0xff] %v1094_v24  ;;  %v944_v27 = vpop.f32.mrb[32].mxu1 }
 0x156   :  { %v1097_v28 = vpop.f32.mrb[32].mxu0  ;;  %v945_v29 = vadd.f32 %v944_v27, %v233_v26  ;;  %v946_v30 = vpop.f32.mrb[33].mxu1 }
 0x157   :  { %v1099_v31 = vpop.f32.mrb[33].mxu0  ;;  %v947_v32 = vadd.f32 %v946_v30, %v233_v26  ;;  %v948_v33 = vpop.f32.mrb[34].mxu1 }
 0x158   :  { %v1101_v34 = vpop.f32.mrb[34].mxu0  ;;  %v1098_v35 = vadd.f32 %v1097_v28, %v945_v29  ;;  %v949_v36 = vadd.f32 %v948_v33, %v238_v25  ;;  %v950_v37 = vpop.f32.mrb[35].mxu1 }
 0x159   :  { %v1103_v38 = vpop.f32.mrb[35].mxu0  ;;  %v1100_v39 = vadd.f32 %v1099_v31, %v947_v32  ;;  %v951_v40 = vadd.f32 %v950_v37, %v238_v25 }
 0x15a   :  { %1168 = vst [vmem:[%s2143_s3 + $0x100] sm:$0xff] %v1098_v35  ;;  %v1102_v41 = vadd.f32 %v1101_v34, %v949_v36 }
 0x15b   :  { %1169 = vst [vmem:[%s2143_s3 + $0x108] sm:$0xff] %v1100_v39  ;;  %v1104_v42 = vadd.f32 %v1103_v38, %v951_v40 }
 0x15c   :  { %1170 = vst [vmem:[%s2143_s3 + $0x110] sm:$0xff] %v1102_v41 }
 0x15d   :  { %1171 = vst [vmem:[%s2143_s3 + $0x118] sm:$0xff] %v1104_v42  ;;  %v954_v45 = vpop.f32.mrb[36].mxu1 }
 0x15e   :  { %v1107_v46 = vpop.f32.mrb[36].mxu0  ;;  %v955_v47 = vadd.f32 %v954_v45, %v243_v44  ;;  %v956_v48 = vpop.f32.mrb[37].mxu1 }
 0x15f   :  { %v1109_v49 = vpop.f32.mrb[37].mxu0  ;;  %v957_v50 = vadd.f32 %v956_v48, %v243_v44  ;;  %v958_v51 = vpop.f32.mrb[38].mxu1 }
 0x160   :  { %v1111_v52 = vpop.f32.mrb[38].mxu0  ;;  %v1108_v53 = vadd.f32 %v1107_v46, %v955_v47  ;;  %v959_v54 = vadd.f32 %v958_v51, %v248_v43  ;;  %v960_v55 = vpop.f32.mrb[39].mxu1 }
 0x161   :  { %v1113_v56 = vpop.f32.mrb[39].mxu0  ;;  %v1110_v57 = vadd.f32 %v1109_v49, %v957_v50  ;;  %v961_v58 = vadd.f32 %v960_v55, %v248_v43 }
 0x162   :  { %1172 = vst [vmem:[%s2143_s3 + $0x120] sm:$0xff] %v1108_v53  ;;  %v1112_v59 = vadd.f32 %v1111_v52, %v959_v54 }
 0x163   :  { %1173 = vst [vmem:[%s2143_s3 + $0x128] sm:$0xff] %v1110_v57  ;;  %v1114_v60 = vadd.f32 %v1113_v56, %v961_v58 }
 0x164   :  { %1174 = vst [vmem:[%s2143_s3 + $0x130] sm:$0xff] %v1112_v59 }
 0x165   :  { %1175 = vst [vmem:[%s2143_s3 + $0x138] sm:$0xff] %v1114_v60  ;;  %v964_v63 = vpop.f32.mrb[40].mxu1 }
 0x166   :  { %v1117_v0 = vpop.f32.mrb[40].mxu0  ;;  %v965_v1 = vadd.f32 %v964_v63, %v253_v62  ;;  %v966_v2 = vpop.f32.mrb[41].mxu1 }
 0x167   :  { %v1119_v3 = vpop.f32.mrb[41].mxu0  ;;  %v967_v4 = vadd.f32 %v966_v2, %v253_v62  ;;  %v968_v5 = vpop.f32.mrb[42].mxu1 }
 0x168   :  { %v1121_v6 = vpop.f32.mrb[42].mxu0  ;;  %v1118_v7 = vadd.f32 %v1117_v0, %v965_v1  ;;  %v969_v8 = vadd.f32 %v968_v5, %v258_v61  ;;  %v970_v9 = vpop.f32.mrb[43].mxu1 }
 0x169   :  { %v1123_v10 = vpop.f32.mrb[43].mxu0  ;;  %v1120_v11 = vadd.f32 %v1119_v3, %v967_v4  ;;  %v971_v12 = vadd.f32 %v970_v9, %v258_v61 }
 0x16a   :  { %1176 = vst [vmem:[%s2143_s3 + $0x140] sm:$0xff] %v1118_v7  ;;  %v1122_v13 = vadd.f32 %v1121_v6, %v969_v8 }
 0x16b   :  { %1177 = vst [vmem:[%s2143_s3 + $0x148] sm:$0xff] %v1120_v11  ;;  %v1124_v14 = vadd.f32 %v1123_v10, %v971_v12 }
 0x16c   :  { %1178 = vst [vmem:[%s2143_s3 + $0x150] sm:$0xff] %v1122_v13 }
 0x16d   :  { %1179 = vst [vmem:[%s2143_s3 + $0x158] sm:$0xff] %v1124_v14  ;;  %v974_v17 = vpop.f32.mrb[44].mxu1 }
 0x16e   :  { %v1127_v18 = vpop.f32.mrb[44].mxu0  ;;  %v975_v19 = vadd.f32 %v974_v17, %v263_v16  ;;  %v976_v20 = vpop.f32.mrb[45].mxu1 }
 0x16f   :  { %v1129_v21 = vpop.f32.mrb[45].mxu0  ;;  %v977_v22 = vadd.f32 %v976_v20, %v263_v16  ;;  %v978_v23 = vpop.f32.mrb[46].mxu1 }
 0x170   :  { %v1131_v24 = vpop.f32.mrb[46].mxu0  ;;  %v1128_v25 = vadd.f32 %v1127_v18, %v975_v19  ;;  %v979_v26 = vadd.f32 %v978_v23, %v268_v15  ;;  %v980_v27 = vpop.f32.mrb[47].mxu1 }
 0x171   :  { %v1133_v28 = vpop.f32.mrb[47].mxu0  ;;  %v1130_v29 = vadd.f32 %v1129_v21, %v977_v22  ;;  %v981_v30 = vadd.f32 %v980_v27, %v268_v15 }
 0x172   :  { %1180 = vst [vmem:[%s2143_s3 + $0x160] sm:$0xff] %v1128_v25  ;;  %v1132_v31 = vadd.f32 %v1131_v24, %v979_v26 }
 0x173   :  { %1181 = vst [vmem:[%s2143_s3 + $0x168] sm:$0xff] %v1130_v29  ;;  %v1134_v32 = vadd.f32 %v1133_v28, %v981_v30 }
 0x174   :  { %1182 = vst [vmem:[%s2143_s3 + $0x170] sm:$0xff] %v1132_v31 }
 0x175   :  { %1183 = vst [vmem:[%s2143_s3 + $0x178] sm:$0xff] %v1134_v32 }

</bundles_post_ra>
